<compile_context>
chip_gen: v7x
topology: tpu7x:2x2x1
jax: 0.10.0
libtpu: 0.0.40
codegen_flags: <defaults>
</compile_context>

<pallas_src>
import functools

import numpy as np
import jax
import jax.numpy as jnp
from jax.experimental import pallas as pl
from jax.experimental.pallas import tpu as pltpu


# ----------------------------------------------------------------------------
# Fused Pallas kernel
# ----------------------------------------------------------------------------
def dssm_kernel(q_ref, d_ref, lut_ref, wc_ref, out_ref, *, L, C, vmax):
    LC = L * C

    # --- stack query/doc ids so doc_sem runs as ONE matmul with M = 2*TB ------
    ids = jnp.concatenate([q_ref[...], d_ref[...]], axis=0).astype(jnp.float32)
    # __toBcode__ rotates the code table by one row: row v holds code((v-1) mod V).
    # Out-of-range ids are not expected; they would decode to code(vmax)/code(id-1).
    m = jnp.where(ids < 0.5, vmax, ids - 1.0)                       # exact small ints

    # --- fused embedding lookup (exact bf16 matmul + VPU bit decode) ----------
    rep = jnp.dot(m.astype(jnp.bfloat16),
                  lut_ref[0:L, :].astype(jnp.bfloat16),
                  preferred_element_type=jnp.float32)               # (2TB, 128)
    inv1 = lut_ref[L:L + 1, :]                                      # 1/2^(6-h), 0 in pad lanes
    inv2 = lut_ref[L + 1:L + 2, :]                                  # 1/2^(7-h), 0 in pad lanes
    bits = jnp.floor(rep * inv1) - 2.0 * jnp.floor(rep * inv2)      # exact 0/1 code bits

    # --- doc_sem Linear + ReLU: one stacked bf16 MXU matmul -------------------
    w1p = wc_ref[0:LC, :].astype(jnp.bfloat16)                      # (128, latent), bf16-exact
    b1 = wc_ref[LC:LC + 1, :]                                       # (1, latent)
    h = jnp.maximum(
        jnp.dot(bits.astype(jnp.bfloat16), w1p,
                preferred_element_type=jnp.float32) + b1, 0.0)      # (2TB, latent)

    # --- q_s - d_s, collapsed learn_gamma + 2-class softmax -------------------
    # softmax([l0, l1]) == [sigmoid(z), 1 - sigmoid(z)] with z = l0 - l1,
    # z = diff @ (w2[:,0]-w2[:,1]) + (b2[0]-b2[1])  -> VPU mul + lane reduce.
    nb = h.shape[0] // 2
    diff = h[:nb, :] - h[nb:, :]                                    # (TB, latent)
    dw2 = wc_ref[LC + 1:LC + 2, :]                                  # (1, latent)
    db2 = wc_ref[LC + 2:LC + 3, 0:1]                                # (1, 1)
    z = jnp.sum(diff * dw2, axis=-1, keepdims=True) + db2           # (TB, 1)
    p = 1.0 / (1.0 + jnp.exp(-z))                                   # one EUP exp per row
    out_ref[:, 0:1] = p
    out_ref[:, 1:2] = 1.0 - p


def dssm_seven_forward(query_ids, doc_ids, params, *, vocab_size, block_b=128):
    """4-input fused forward.  Batch-tiled grid; weights stay VMEM-resident."""
    B, L = query_ids.shape
    C = 16                                   # padded per-position code width (L*C = 128)
    TB = B if B <= block_b else block_b
    assert B % TB == 0, "batch must be a multiple of the batch tile"
    lut, wconsts = params["lut"], params["wconsts"]

    kernel = functools.partial(dssm_kernel, L=L, C=C,
                               vmax=float(vocab_size - 1))
    return pl.pallas_call(
        kernel,
        out_shape=jax.ShapeDtypeStruct((B, 2), jnp.float32),
        grid=(B // TB,),
        in_specs=[
            pl.BlockSpec((TB, L), lambda i: (i, 0)),          # query ids block
            pl.BlockSpec((TB, L), lambda i: (i, 0)),          # doc ids block
            pl.BlockSpec(lut.shape, lambda i: (0, 0)),        # resident constants
            pl.BlockSpec(wconsts.shape, lambda i: (0, 0)),    # resident weights
        ],
        out_specs=pl.BlockSpec((TB, 2), lambda i: (i, 0)),
        compiler_params=pltpu.CompilerParams(
            dimension_semantics=("parallel",)),
    )(query_ids, doc_ids, lut, wconsts)


# ----------------------------------------------------------------------------
# Deterministic parameter construction (mirrors DSSMSeven.__init__)
# ----------------------------------------------------------------------------
def build_embedding_table(vocab):
    """Replicates __toBcode__: 7-bit binary codes, last row rotated to front."""
    t_ = []
    for char_ in vocab:
        b_ = bin(int(vocab[char_]))[2:]
        p_ = [int(k) for k in '0' * (7 - len(b_)) + b_]
        t_.append(p_)
    t_ = [t_[-1]] + t_[:-1]
    return np.array(t_, dtype=np.float32)


def make_linear_params(key, in_features, out_features):
    """PyTorch nn.Linear default init: U(-1/sqrt(in), 1/sqrt(in)).

    Weights are rounded to bf16-representable f32 so every MXU product term is
    exact with native bf16 operands.
    """
    kw, kb = jax.random.split(key)
    bound = 1.0 / np.sqrt(in_features)
    w = jax.random.uniform(kw, (in_features, out_features), jnp.float32,
                           minval=-bound, maxval=bound)
    b = jax.random.uniform(kb, (1, out_features), jnp.float32,
                           minval=-bound, maxval=bound)
    w = w.astype(jnp.bfloat16).astype(jnp.float32)
    b = b.astype(jnp.bfloat16).astype(jnp.float32)
    return w, b


def prepare_params(emb_np, w1, b1, w2, b2, max_len, vocab_size):
    """Precompute the two constant kernel inputs (lut, wconsts)."""
    V, H = emb_np.shape                      # (vocab_size, 7)
    L = max_len
    C = 16                                   # pad code width 7 -> 16 => L*C = 128 lanes
    LC = L * C
    latent = np.asarray(w1).shape[1]

    # Verify the arithmetic decode used in-kernel matches __toBcode__'s table.
    m_of_v = (np.arange(V) + V - 1) % V
    codes = ((m_of_v[:, None] >> (H - 1 - np.arange(H))[None, :]) & 1).astype(np.float32)
    assert np.array_equal(codes, emb_np), "code table is not the rotated binary code"

    # lut: rows 0..L-1 replicate each position's id over its C lanes (0/1 matrix);
    #      row L   = 1/2^(6-h)  (0 in padded lanes)
    #      row L+1 = 1/2^(7-h)  (0 in padded lanes)
    lut = np.zeros((16, LC), dtype=np.float32)
    lut[0:L, :] = np.kron(np.eye(L, dtype=np.float32),
                          np.ones((1, C), dtype=np.float32))
    h_idx = np.tile(np.arange(C), L)
    inv1 = np.where(h_idx < H, 2.0 ** (h_idx - (H - 1)), 0.0).astype(np.float32)
    lut[L, :] = inv1
    lut[L + 1, :] = 0.5 * inv1

    # wconsts: rows 0..LC-1 = doc_sem weight re-indexed to the padded code layout,
    #          row LC = b1, row LC+1 = w2[:,0]-w2[:,1], row LC+2 = b2[0]-b2[1].
    w1 = np.asarray(w1); b1 = np.asarray(b1)
    w2 = np.asarray(w2); b2 = np.asarray(b2)
    wconsts = np.zeros((LC + 8, latent), dtype=np.float32)
    for l in range(L):
        wconsts[l * C:l * C + H, :] = w1[l * H:(l + 1) * H, :]
    wconsts[LC, :] = b1[0]
    wconsts[LC + 1, :] = w2[:, 0] - w2[:, 1]
    wconsts[LC + 2, :] = b2[0, 0] - b2[0, 1]

    return dict(lut=jnp.asarray(lut), wconsts=jnp.asarray(wconsts))


# ----------------------------------------------------------------------------
# Pure-JAX reference (literal transcription of the PyTorch forward)
# ----------------------------------------------------------------------------
def reference_forward(query_ids, doc_ids, emb_table, w1, b1, w2, b2):
    B, L = query_ids.shape
    H = emb_table.shape[1]
    hp = jax.lax.Precision.HIGHEST
    q = emb_table[query_ids].reshape(B, L * H)
    d = emb_table[doc_ids].reshape(B, L * H)
    q_s = jax.nn.relu(jnp.dot(q, w1, precision=hp) + b1)
    d_s = jax.nn.relu(jnp.dot(d, w1, precision=hp) + b1)
    logits = jnp.dot(q_s - d_s, w2, precision=hp) + b2
    return jax.nn.softmax(logits, axis=1)


if __name__ == "__main__":
    # config (small, consistent with the module; hidden_size hard-coded to 7)
    vocab_size = 30
    max_len = 8
    hidden_size = 7
    latent_out = 32
    batch = 8

    vocab = {chr(ord('a') + i): i for i in range(vocab_size)}
    emb_np = build_embedding_table(vocab)               # (vocab_size, 7)
    emb_table = jnp.asarray(emb_np)

    key = jax.random.PRNGKey(0)
    k_ds, k_lg, k_q, k_d = jax.random.split(key, 4)

    w1, b1 = make_linear_params(k_ds, max_len * hidden_size, latent_out)
    w2, b2 = make_linear_params(k_lg, latent_out, 2)

    query_ids = jax.random.randint(k_q, (batch, max_len), 0, vocab_size,
                                   dtype=jnp.int32)
    doc_ids = jax.random.randint(k_d, (batch, max_len), 0, vocab_size,
                                 dtype=jnp.int32)

    params = prepare_params(emb_np, w1, b1, w2, b2, max_len, vocab_size)

    fwd = jax.jit(functools.partial(dssm_seven_forward, vocab_size=vocab_size))
    out = jax.block_until_ready(fwd(query_ids, doc_ids, params))

    ref = jax.block_until_ready(
        reference_forward(query_ids, doc_ids, emb_table, w1, b1, w2, b2))

    # sanity: shape, softmax rows sum to 1, and match vs. the reference forward
    assert out.shape == (batch, 2)
    np.testing.assert_allclose(np.asarray(jnp.sum(out, axis=1)),
                               np.ones(batch), rtol=1e-5, atol=1e-5)
    np.testing.assert_allclose(np.asarray(out), np.asarray(ref),
                               rtol=1e-4, atol=1e-5)

    print("KERNEL_OK")
</pallas_src>

<mosaic_0001>
module attributes {stable_mosaic.version = 11 : i64} {
  func.func @dssm_kernel(%arg0: i32, %arg1: memref<8x8xi32, #tpu.memory_space<vmem>>, %arg2: memref<8x8xi32, #tpu.memory_space<vmem>>, %arg3: memref<16x128xf32, #tpu.memory_space<vmem>>, %arg4: memref<136x32xf32, #tpu.memory_space<vmem>>, %arg5: memref<8x2xf32, #tpu.memory_space<vmem>>) attributes {dimension_semantics = [#tpu.dimension_semantics<parallel>], iteration_bounds = array<i64: 1>, scalar_prefetch = 0 : i64, scratch_operands = 0 : i64, tpu.core_type = #tpu.core_type<tc>, window_params = [{transform_indices = @transform_0, window_bounds = array<i64: 8, 8>}, {transform_indices = @transform_1, window_bounds = array<i64: 8, 8>}, {pipeline_mode = #tpu.pipeline_mode<synchronous>, transform_indices = @transform_2, window_bounds = array<i64: 16, 128>}, {pipeline_mode = #tpu.pipeline_mode<synchronous>, transform_indices = @transform_3, window_bounds = array<i64: 136, 32>}, {transform_indices = @transform_4, window_bounds = array<i64: 8, 2>}]} {
    %c0 = arith.constant 0 : index
    %c0_0 = arith.constant 0 : index
    %0 = vector.load %arg1[%c0, %c0_0] : memref<8x8xi32, #tpu.memory_space<vmem>>, vector<8x8xi32>
    %c0_1 = arith.constant 0 : index
    %c0_2 = arith.constant 0 : index
    %1 = vector.load %arg2[%c0_1, %c0_2] : memref<8x8xi32, #tpu.memory_space<vmem>>, vector<8x8xi32>
    %2 = tpu.concatenate %0, %1 in 0 : vector<8x8xi32>, vector<8x8xi32> -> vector<16x8xi32>
    %3 = arith.sitofp %2 : vector<16x8xi32> to vector<16x8xf32>
    %cst = arith.constant 5.000000e-01 : f32
    %4 = vector.broadcast %cst : f32 to vector<16x8xf32>
    %5 = arith.cmpf olt, %3, %4 : vector<16x8xf32>
    %cst_3 = arith.constant 1.000000e+00 : f32
    %6 = vector.broadcast %cst_3 : f32 to vector<16x8xf32>
    %7 = arith.subf %3, %6 : vector<16x8xf32>
    %cst_4 = arith.constant 2.900000e+01 : f32
    %8 = vector.broadcast %cst_4 : f32 to vector<16x8xf32>
    %9 = arith.select %5, %8, %7 : vector<16x8xi1>, vector<16x8xf32>
    %10 = arith.truncf %9 : vector<16x8xf32> to vector<16x8xbf16>
    %c0_5 = arith.constant 0 : index
    %c0_6 = arith.constant 0 : index
    %11 = vector.load %arg3[%c0_5, %c0_6] : memref<16x128xf32, #tpu.memory_space<vmem>>, vector<8x128xf32>
    %12 = arith.truncf %11 : vector<8x128xf32> to vector<8x128xbf16>
    %cst_7 = arith.constant dense<0.000000e+00> : vector<16x128xf32>
    %13 = tpu.matmul %10, %12, %cst_7 {dimension_numbers = #tpu.dot_dimension_numbers<[1], [0], [0], [1], [0, 0, 1, 1], [], []>} : vector<16x8xbf16>, vector<8x128xbf16>, vector<16x128xf32> -> vector<16x128xf32>
    %c8 = arith.constant 8 : index
    %c0_8 = arith.constant 0 : index
    %14 = vector.load %arg3[%c8, %c0_8] : memref<16x128xf32, #tpu.memory_space<vmem>>, vector<1x128xf32>
    %c9 = arith.constant 9 : index
    %c0_9 = arith.constant 0 : index
    %15 = vector.load %arg3[%c9, %c0_9] : memref<16x128xf32, #tpu.memory_space<vmem>>, vector<1x128xf32>
    %16 = vector.broadcast %14 : vector<1x128xf32> to vector<16x128xf32>
    %17 = arith.mulf %13, %16 : vector<16x128xf32>
    %18 = math.floor %17 : vector<16x128xf32>
    %19 = vector.broadcast %15 : vector<1x128xf32> to vector<16x128xf32>
    %20 = arith.mulf %13, %19 : vector<16x128xf32>
    %21 = math.floor %20 : vector<16x128xf32>
    %cst_10 = arith.constant 2.000000e+00 : f32
    %22 = vector.broadcast %cst_10 : f32 to vector<16x128xf32>
    %23 = arith.mulf %22, %21 : vector<16x128xf32>
    %24 = arith.subf %18, %23 : vector<16x128xf32>
    %c0_11 = arith.constant 0 : index
    %c0_12 = arith.constant 0 : index
    %25 = vector.load %arg4[%c0_11, %c0_12] : memref<136x32xf32, #tpu.memory_space<vmem>>, vector<128x32xf32>
    %26 = arith.truncf %25 : vector<128x32xf32> to vector<128x32xbf16>
    %c128 = arith.constant 128 : index
    %c0_13 = arith.constant 0 : index
    %27 = vector.load %arg4[%c128, %c0_13] : memref<136x32xf32, #tpu.memory_space<vmem>>, vector<1x32xf32>
    %28 = arith.truncf %24 : vector<16x128xf32> to vector<16x128xbf16>
    %cst_14 = arith.constant dense<0.000000e+00> : vector<16x32xf32>
    %29 = tpu.matmul %28, %26, %cst_14 {dimension_numbers = #tpu.dot_dimension_numbers<[1], [0], [0], [1], [0, 0, 1, 1], [], []>} : vector<16x128xbf16>, vector<128x32xbf16>, vector<16x32xf32> -> vector<16x32xf32>
    %30 = vector.broadcast %27 : vector<1x32xf32> to vector<16x32xf32>
    %31 = arith.addf %29, %30 : vector<16x32xf32>
    %cst_15 = arith.constant 0.000000e+00 : f32
    %32 = vector.broadcast %cst_15 : f32 to vector<16x32xf32>
    %33 = arith.maximumf %31, %32 : vector<16x32xf32>
    %34 = vector.extract_strided_slice %33 {offsets = [0, 0], sizes = [8, 32], strides = [1, 1]} : vector<16x32xf32> to vector<8x32xf32>
    %35 = vector.extract_strided_slice %33 {offsets = [8, 0], sizes = [8, 32], strides = [1, 1]} : vector<16x32xf32> to vector<8x32xf32>
    %36 = arith.subf %34, %35 : vector<8x32xf32>
    %c129 = arith.constant 129 : index
    %c0_16 = arith.constant 0 : index
    %37 = vector.load %arg4[%c129, %c0_16] : memref<136x32xf32, #tpu.memory_space<vmem>>, vector<1x32xf32>
    %c130 = arith.constant 130 : index
    %c0_17 = arith.constant 0 : index
    %38 = vector.load %arg4[%c130, %c0_17] : memref<136x32xf32, #tpu.memory_space<vmem>>, vector<1x1xf32>
    %39 = vector.broadcast %37 : vector<1x32xf32> to vector<8x32xf32>
    %40 = arith.mulf %36, %39 : vector<8x32xf32>
    %cst_18 = arith.constant dense<0.000000e+00> : vector<8xf32>
    %41 = vector.multi_reduction <add>, %40, %cst_18 [1] : vector<8x32xf32> to vector<8xf32>
    %42 = vector.shape_cast %41 : vector<8xf32> to vector<8x1xf32>
    %43 = vector.broadcast %38 : vector<1x1xf32> to vector<8x1xf32>
    %44 = arith.addf %42, %43 : vector<8x1xf32>
    %cst_19 = arith.constant 0.000000e+00 : f32
    %45 = vector.broadcast %cst_19 : f32 to vector<8x1xf32>
    %46 = arith.subf %45, %44 : vector<8x1xf32>
    %47 = math.exp %46 : vector<8x1xf32>
    %cst_20 = arith.constant 1.000000e+00 : f32
    %48 = vector.broadcast %cst_20 : f32 to vector<8x1xf32>
    %49 = arith.addf %48, %47 : vector<8x1xf32>
    %cst_21 = arith.constant 1.000000e+00 : f32
    %50 = vector.broadcast %cst_21 : f32 to vector<8x1xf32>
    %51 = arith.divf %50, %49 : vector<8x1xf32>
    %c0_22 = arith.constant 0 : index
    %c0_23 = arith.constant 0 : index
    %52 = vector.load %arg5[%c0_22, %c0_23] : memref<8x2xf32, #tpu.memory_space<vmem>>, vector<8x1xf32>
    tpu.vector_store %arg5[%c0_22, %c0_23], %51 {strides = array<i32>} : memref<8x2xf32, #tpu.memory_space<vmem>>, vector<8x1xf32>,
    %cst_24 = arith.constant 1.000000e+00 : f32
    %53 = vector.broadcast %cst_24 : f32 to vector<8x1xf32>
    %54 = arith.subf %53, %51 : vector<8x1xf32>
    %c0_25 = arith.constant 0 : index
    %c1 = arith.constant 1 : index
    %55 = vector.load %arg5[%c0_25, %c1] : memref<8x2xf32, #tpu.memory_space<vmem>>, vector<8x1xf32>
    tpu.vector_store %arg5[%c0_25, %c1], %54 {strides = array<i32>} : memref<8x2xf32, #tpu.memory_space<vmem>>, vector<8x1xf32>,
    return
  }
  func.func @transform_0(%arg0: i32) -> (i32, i32) {
    %c0_i32 = arith.constant 0 : i32
    %c0_i32_0 = arith.constant 0 : i32
    return %arg0, %c0_i32 : i32, i32
  }
  func.func @transform_1(%arg0: i32) -> (i32, i32) {
    %c0_i32 = arith.constant 0 : i32
    %c0_i32_0 = arith.constant 0 : i32
    return %arg0, %c0_i32 : i32, i32
  }
  func.func @transform_2(%arg0: i32) -> (i32, i32) {
    %c0_i32 = arith.constant 0 : i32
    %c0_i32_0 = arith.constant 0 : i32
    %c0_i32_1 = arith.constant 0 : i32
    return %c0_i32, %c0_i32_0 : i32, i32
  }
  func.func @transform_3(%arg0: i32) -> (i32, i32) {
    %c0_i32 = arith.constant 0 : i32
    %c0_i32_0 = arith.constant 0 : i32
    %c0_i32_1 = arith.constant 0 : i32
    return %c0_i32, %c0_i32_0 : i32, i32
  }
  func.func @transform_4(%arg0: i32) -> (i32, i32) {
    %c0_i32 = arith.constant 0 : i32
    %c0_i32_0 = arith.constant 0 : i32
    return %arg0, %c0_i32 : i32, i32
  }
}

</mosaic_0001>

<bundles_post_ra>
// kernel: dssm_seven_forward.1
= control target key start
LH: loop header
LB: loop body
LE: loop exit
PB: predicated region body
PF: predicated region fallthrough
CT: control target
= control target key end

     0   :  { %v263_v0 = vmov 0.0   ;;  %vm35_vm0 = vcmask 1043456   ;;  %vm264_vm1 = vmmov 0   ;;  %vm31_vm4 = vcmask 64512   ;;  %s265_s8 = smov 1   ;;  %s369_s2 = inlined_call_operand.vmem [shape: f32[16,128], index: 2, kind: input, shape index: {}]   ;;  %s370_s0 = inlined_call_operand.vmem [shape: s32[8,8], index: 0, kind: input, shape index: {}]   ;;  %s371_s1 = inlined_call_operand.vmem [shape: s32[8,8], index: 1, kind: input, shape index: {}]   ;;  %s372_s3 = inlined_call_operand.vmem [shape: f32[136,32], index: 3, kind: input, shape index: {}]   ;;  %s373_s4 = inlined_call_operand.vmem [shape: f32[8,2], index: 4, kind: output, shape index: {}]  }
   0x1   :  { %230 = vmatprep.subr.bf16.mxu0 %v263_v0  ;;  %v29_v1 = vld [vmem:[%s369_s2] sm:$0xff]  ;;  %232 = vmatprep.mubr.msk.bf16.mxu0 %vm264_vm1, %v263_v0  ;;  %v103_v8 = vld [vmem:[%s372_s3 + $0x8] sm:$0xff]  ;;  %v104_v9 = vld [vmem:[%s372_s3 + $0x10] sm:$0xff]  ;;  %vm183_vm5 = vcmask 261120   ;;  %vm198_vm6 = vcmask 7168   ;;  %vm205_vm7 = vcmask 15368  }
   0x2   :  { %v18_v2 = vld [vmem:[%s370_s0] sm:$0xff]  ;;  %v30_v4 = vpack.c.bf16 %v29_v1, %v29_v1  ;;  %236 = vmatprep.subr.bf16.mxu1 %v263_v0  ;;  %252 = vmatprep.mubr.msk.bf16.mxu1 %vm264_vm1, %v263_v0  ;;  %v105_v11 = vld [vmem:[%s372_s3 + $0x18] sm:$0xff]  ;;  %v107_v18 = vld [vmem:[%s372_s3 + $0x28] sm:$0xff] }
   0x3   :  { %v19_v3 = vld [vmem:[%s371_s1] sm:$0xff]  ;;  %v20_v5 = vcvt.s32.f32 %v18_v2  ;;  %v119_v15 = vpack.c.bf16 %v105_v11, %v104_v9  ;;  %v108_v22 = vld [vmem:[%s372_s3 + $0x30] sm:$0xff]  ;;  %v109_v23 = vld [vmem:[%s372_s3 + $0x38] sm:$0xff] }
   0x4   :  { %v21_v6 = vcvt.s32.f32 %v19_v3  ;;  %v102_v7 = vld [vmem:[%s372_s3] sm:$0xff]  ;;  %v37_v12 = vsel %vm35_vm0, %v30_v4, 0  ;;  %v121_v24 = vpack.c.bf16 %v109_v23, %v108_v22  ;;  %v111_v26 = vld [vmem:[%s372_s3 + $0x48] sm:$0xff]  ;;  %v112_v28 = vld [vmem:[%s372_s3 + $0x50] sm:$0xff] }
   0x5   :  { %v118_v10 = vpack.c.bf16 %v103_v8, %v102_v7  ;;  %vm22_vm2 = vcmp.lt.f32.partialorder %v20_v5, 0.5  ;;  %v211_v13 = vadd.f32 -1.0, %v20_v5  ;;  %231 = vmatpush3.bf16.msra.mxu0 %v37_v12  ;;  %v106_v17 = vld [vmem:[%s372_s3 + $0x20] sm:$0xff]  ;;  %v113_v29 = vld [vmem:[%s372_s3 + $0x58] sm:$0xff]  ;;  %v115_v32 = vld [vmem:[%s372_s3 + $0x68] sm:$0xff] }
   0x6   :  { %vm23_vm3 = vcmp.lt.f32.partialorder %v21_v6, 0.5  ;;  %v212_v14 = vadd.f32 -1.0, %v21_v6  ;;  %v120_v21 = vpack.c.bf16 %v107_v18, %v106_v17  ;;  %v110_v25 = vld [vmem:[%s372_s3 + $0x40] sm:$0xff]  ;;  %v123_v30 = vpack.c.bf16 %v113_v29, %v112_v28  ;;  %v116_v34 = vld [vmem:[%s372_s3 + $0x70] sm:$0xff]  ;;  %v117_v35 = vld [vmem:[%s372_s3 + $0x78] sm:$0xff] }
   0x7   :  { %237 = vmatpush3.bf16.msra.mxu1 %v118_v10  ;;  %v26_v16 = vsel %vm22_vm2, 29.0, %v211_v13  ;;  %v122_v27 = vpack.c.bf16 %v111_v26, %v110_v25  ;;  %v114_v31 = vld [vmem:[%s372_s3 + $0x60] sm:$0xff]  ;;  %v125_v36 = vpack.c.bf16 %v117_v35, %v116_v34  ;;  %v215_v37 = vld [vmem:[%s369_s2 + $0x9] ss:$0 sm:$0xff]  ;;  %v214_v39 = vld [vmem:[%s369_s2 + $0x8] ss:$0 sm:$0xff] }
   0x8   :  { %238 = vmatprep.subr.bf16.mxu1 %v263_v0  ;;  %v27_v19 = vsel %vm23_vm3, 29.0, %v212_v14  ;;  %v124_v33 = vpack.c.bf16 %v115_v32, %v114_v31  ;;  %v216_v56 = vld [vmem:[%s372_s3 + $0x80] ss:$0 sm:$0xff]  ;;  %v217_v1 = vld [vmem:[%s372_s3 + $0x81] ss:$0 sm:$0xff] }
   0x9   :  { %v28_v20 = vpack.c.bf16 %v27_v19, %v26_v16  ;;  %v218_v5 = vld [vmem:[%s372_s3 + $0x82] ss:$0 sm:$0xff] }
   0xb   :  { %239 = vmatpush3.bf16.msra.mxu1 %v119_v15  ;;  %233 = vmatmul.mubr.msk.bf16.vlgmr.msra.gmra.mrb[0].mxu0 %vm31_vm4, %v28_v20 }
   0xc   :  { %240 = vmatprep.subr.bf16.mxu1 %v263_v0 }
   0xf   :  { %241 = vmatpush3.bf16.msra.mxu1 %v120_v21 }
  0x10   :  { %242 = vmatprep.subr.bf16.mxu1 %v263_v0 }
  0x13   :  { %243 = vmatpush3.bf16.msra.mxu1 %v121_v24 }
  0x14   :  { %244 = vmatprep.subr.bf16.mxu1 %v263_v0 }
  0x17   :  { %245 = vmatpush3.bf16.msra.mxu1 %v122_v27 }
  0x18   :  { %246 = vmatprep.subr.bf16.mxu1 %v263_v0 }
  0x1b   :  { %247 = vmatpush3.bf16.msra.mxu1 %v123_v30 }
  0x1c   :  { %248 = vmatprep.subr.bf16.mxu1 %v263_v0 }
  0x1f   :  { %249 = vmatpush3.bf16.msra.mxu1 %v124_v33 }
  0x20   :  { %250 = vmatprep.subr.bf16.mxu1 %v263_v0 }
  0x23   :  { %251 = vmatpush3.bf16.msra.mxu1 %v125_v36 }
  0xde   :  { %v73_v38 = vpop.f32.mrb[0].mxu0 }
  0xdf   :  { %v94_v40 = vmul.f32 %v215_v37, %v73_v38  ;;  %v234_v41 = vpop.f32.mrb[1].mxu0  ;;  %v86_v43 = vmul.f32 %v214_v39, %v73_v38 }
  0xe0   :  { %v76_v42 = vpop.f32.mrb[2].mxu0 }
  0xe1   :  { %v96_v44 = vfloor.f32 %v94_v40  ;;  %v87_v45 = vmul.f32 %v214_v39, %v76_v42  ;;  %v95_v46 = vmul.f32 %v215_v37, %v76_v42  ;;  %v235_v47 = vpop.f32.mrb[3].mxu0  ;;  %v88_v50 = vfloor.f32 %v86_v43 }
  0xe3   :  { %v98_v48 = vmul.f32 2.0, %v96_v44  ;;  %v97_v49 = vfloor.f32 %v95_v46  ;;  %v89_v51 = vfloor.f32 %v87_v45 }
  0xe5   :  { %v99_v52 = vmul.f32 2.0, %v97_v49  ;;  %v100_v53 = vsub.f32 %v88_v50, %v98_v48 }
  0xe7   :  { %v101_v54 = vsub.f32 %v89_v51, %v99_v52 }
  0xe9   :  { %v127_v55 = vpack.c.bf16 %v101_v54, %v100_v53 }
  0xeb   :  { %253 = vmatmul.mubr.bf16.vlgmr.msra.gmra.mrb[0].mxu1 %v127_v55 }
 0x1be   :  { %v166_v57 = vpop.f32.mrb[0].mxu1 }
 0x1bf   :  { %v167_v58 = vadd.f32 %v216_v56, %v166_v57  ;;  %v254_v59 = vpop.f32.mrb[1].mxu1 }
 0x1c0   :  { %v169_v60 = vpop.f32.mrb[2].mxu1 }
 0x1c1   :  { %v170_v61 = vadd.f32 %v216_v56, %v169_v60  ;;  %v255_v62 = vpop.f32.mrb[3].mxu1  ;;  %v173_v63 = vmax.f32 %v167_v58, 0.0 }
 0x1c3   :  { %v174_v0 = vmax.f32 %v170_v61, 0.0 }
 0x1c5   :  { %v175_v2 = vsub.f32 %v173_v63, %v174_v0 }
 0x1c7   :  { %v182_v3 = vmul.f32 %v217_v1, %v175_v2 }
 0x1c9   :  { %v184_v4 = vsel %vm183_vm5, %v182_v3, 0.0 }
 0x1ca   :  { %185 = vadd.xlane.f32.xlu0 %v184_v4 }
 0x257   :  { %v186_v6 = vpop.xlane.xlu0 %185 }
 0x258   :  { %v191_v7 = vadd.f32 %v218_v5, %v186_v6 }
 0x25a   :  { %v192_v8 = vsub.f32 0.0, %v191_v7 }
 0x25c   :  { %v193_v9 = vmul.f32 1.442695, %v192_v8 }
 0x25e   :  { %259 = vpow2.f32 %v193_v9 }
 0x268   :  { %v260_v10 = vpop.eup %259 }
 0x269   :  { %v195_v11 = vadd.f32 1.0, %v260_v10 }
 0x26b   :  { %261 = vrcp.f32 %v195_v11 }
 0x275   :  { %v262_v12 = vpop.eup %261 }
 0x276   :  { %v200_v13 = vsub.f32 1.0, %v262_v12  ;;  %199 = vst.msk [vmem:[%s373_s4] sm:$0xff] %vm198_vm6, %v262_v12 }
 0x278   :  { %202 = vrot.lane.b32.xlu0 %v200_v13, %s265_s8 }
 0x2ea   :  { %v203_v14 = vpop.permute.xlu0 %202 }
 0x2eb   :  { %206 = vst.msk [vmem:[%s373_s4] sm:$0xff] %vm205_vm7, %v203_v14 }

</bundles_post_ra>
